<compile_context>
chip_gen: v6e
topology: v6e:2x2x1
jax: 0.10.0
libtpu: 0.0.40
codegen_flags: <defaults>
</compile_context>

<pallas_src>
import functools

import jax
import jax.numpy as jnp
from jax.experimental import pallas as pl
from jax.experimental.pallas import tpu as pltpu

_MiB = 1024 * 1024

_SQRT_HALF = 0.7071067811865476
# Abramowitz & Stegun 7.1.26 erf coefficients (max abs error 1.5e-7).
_ERF_P = 0.3275911
_ERF_A = (0.254829592, -0.284496736, 1.421413741, -1.453152027, 1.061405429)


def _round_up(x, m):
    return (x + m - 1) // m * m


def _device_kind():
    try:
        return jax.devices()[0].device_kind.lower()
    except Exception:
        return ""


def _is_v7():
    kind = _device_kind()
    return ("v7" in kind) or ("7x" in kind)


def _vmem_capacity_bytes():
    get_info = getattr(pltpu, "get_tpu_info", None)
    if get_info is not None:
        try:
            cap = getattr(get_info(), "vmem_capacity_bytes", None)
            if cap:
                return int(cap)
        except Exception:
            pass
    return 64 * _MiB if _is_v7() else 128 * _MiB


def _pick_chunk(th):
    """Largest multiple-of-128 chunk width <= 512 that divides th."""
    for cw in (512, 384, 256, 128):
        if cw <= th and th % cw == 0:
            return cw
    return th


def _vmem_estimate(tm, th, dim_p, out_p, x_bytes, w_bytes, out_bytes):
    cw = _pick_chunk(th)
    x_tiles = 2 * tm * dim_p * x_bytes                  # double-buffered x tiles
    o_tiles = 2 * tm * out_p * out_bytes                # double-buffered out tiles
    w_tiles = 2 * (dim_p * th + th * out_p) * w_bytes   # double-buffered W1 / W2 tiles
    biases = 2 * 8 * (2 * dim_p + th + out_p) * 4       # (1, n) blocks pad to 8 sublanes
    scratch = tm * dim_p * w_bytes + tm * out_p * 4     # xn cache + f32 accumulator
    temps = 3 * tm * cw * 4                             # h chunk + GELU temporaries
    return x_tiles + o_tiles + w_tiles + biases + scratch + temps


def _tm_candidates(tm0, row_align):
    cands = []
    t = tm0
    while t >= row_align:
        if not cands or cands[-1] != t:
            cands.append(t)
        if t == row_align:
            break
        t = max(row_align, _round_up(t // 2, row_align))
    return cands


def _gelu_exact(x):
    """Exact (erf-form) GELU built from mul/add/exp only (padding-/lowering-safe)."""
    z = x * _SQRT_HALF
    a = jnp.abs(z)
    t = 1.0 / (1.0 + _ERF_P * a)
    a1, a2, a3, a4, a5 = _ERF_A
    poly = t * (a1 + t * (a2 + t * (a3 + t * (a4 + t * a5))))
    erf_abs = 1.0 - poly * jnp.exp(-(a * a))
    erf = jnp.where(z < 0.0, -erf_abs, erf_abs)
    return 0.5 * x * (1.0 + erf)


def _ff_kernel(x_ref, g_ref, b_ref, w1_ref, b1_ref, w2_ref, b2_ref,
               o_ref, xn_ref, acc_ref, *, eps, true_dim, compute_dtype, n_sub):
    k = pl.program_id(1)
    dim_p = x_ref.shape[-1]
    th = w1_ref.shape[-1]
    sub = th // n_sub

    @pl.when(k == 0)
    def _():
        # --- LayerNorm in f32 (VPU/EUP), once per token tile, cached in VMEM ---
        x = x_ref[...].astype(jnp.float32)
        if true_dim == dim_p:
            mu = jnp.mean(x, axis=-1, keepdims=True)
            xc = x - mu
            var = jnp.mean(xc * xc, axis=-1, keepdims=True)
        else:
            # feature dim zero-padded to a multiple of 128: padding-safe statistics.
            mu = jnp.sum(x, axis=-1, keepdims=True) * (1.0 / true_dim)
            lane = jax.lax.broadcasted_iota(jnp.int32, x.shape, 1)
            xc = jnp.where(lane < true_dim, x - mu, 0.0)
            var = jnp.sum(xc * xc, axis=-1, keepdims=True) * (1.0 / true_dim)
        xn = (xc * jax.lax.rsqrt(var + eps) * g_ref[...].astype(jnp.float32)
              + b_ref[...].astype(jnp.float32))
        xn_ref[...] = xn.astype(compute_dtype)
        # Seed the accumulator with the output bias (Dropout p=0 is the identity),
        # so the epilogue is a plain cast.
        acc_ref[...] = jnp.broadcast_to(b2_ref[...].astype(jnp.float32), acc_ref.shape)

    def chunk(j, carry):
        j0 = pl.multiple_of(j * sub, 128)
        # Linear(dim -> sub) on the MXU, f32 accumulation.
        h = jnp.dot(xn_ref[...], w1_ref[:, pl.ds(j0, sub)],
                    preferred_element_type=jnp.float32)
        h = h + b1_ref[:, pl.ds(j0, sub)].astype(jnp.float32)
        h = _gelu_exact(h)
        # Linear(sub -> out), accumulated in f32.  (GELU of this chunk overlaps
        # with the matmuls of the next chunk when unrolled.)
        acc_ref[...] += jnp.dot(h.astype(compute_dtype), w2_ref[pl.ds(j0, sub), :],
                                preferred_element_type=jnp.float32)
        return carry

    jax.lax.fori_loop(0, n_sub, chunk, 0, unroll=True)

    @pl.when(k == pl.num_programs(1) - 1)
    def _():
        o_ref[...] = acc_ref[...].astype(o_ref.dtype)


def feed_forward(x, params, *, eps=1e-5, matmul_dtype=jnp.bfloat16,
                 stream_dtype=None, out_dtype=None, tm_max=None):
    """Fused FeedForward: x (B, S, dim) -> (B, S, output_dim)."""
    gamma, beta, w1, b1, w2, b2 = params
    B, S, dim = x.shape
    hidden = w1.shape[1]
    out_dim = w2.shape[1]
    N = B * S

    stream_dtype = x.dtype if stream_dtype is None else stream_dtype
    out_dtype = x.dtype if out_dtype is None else out_dtype

    is_v7 = _is_v7()
    if tm_max is None:
        tm_max = 256 if is_v7 else 512

    # --- pad feature / hidden / output dims to lane-dense multiples of 128 ---
    dim_p = _round_up(dim, 128)
    hidden_p = _round_up(hidden, 128)
    out_p = _round_up(out_dim, 128)

    w1c = jnp.pad(w1.astype(matmul_dtype), ((0, dim_p - dim), (0, hidden_p - hidden)))
    w2c = jnp.pad(w2.astype(matmul_dtype), ((0, hidden_p - hidden), (0, out_p - out_dim)))
    b1c = jnp.pad(b1.astype(jnp.float32), ((0, 0), (0, hidden_p - hidden)))
    b2c = jnp.pad(b2.astype(jnp.float32), ((0, 0), (0, out_p - out_dim)))
    gammac = jnp.pad(gamma.astype(jnp.float32), ((0, 0), (0, dim_p - dim)))
    betac = jnp.pad(beta.astype(jnp.float32), ((0, 0), (0, dim_p - dim)))

    # --- token tile & hidden tile selection against the device's VMEM budget ---
    row_align = 16 if (jnp.dtype(matmul_dtype).itemsize < 4
                       or jnp.dtype(stream_dtype).itemsize < 4) else 8
    tm_max = max(row_align, _round_up(tm_max, row_align))
    tm0 = min(tm_max, _round_up(N, row_align))

    vmem_cap = _vmem_capacity_bytes()
    vmem_limit = max(32 * _MiB, vmem_cap - 16 * _MiB)
    budget = int(0.7 * vmem_limit)

    x_bytes = jnp.dtype(stream_dtype).itemsize
    w_bytes = jnp.dtype(matmul_dtype).itemsize
    o_bytes = jnp.dtype(out_dtype).itemsize

    def fits(tm_, th_):
        return _vmem_estimate(tm_, th_, dim_p, out_p, x_bytes, w_bytes, o_bytes) <= budget

    tm = th = None
    # 1) weight-stationary: keep the whole hidden dim (num_k == 1) so W1/W2 are
    #    DMA'd from HBM exactly once for the entire grid.
    for t in _tm_candidates(tm0, row_align):
        if t < min(tm0, 128):   # don't shrink the MXU row tile too far just for this
            break
        if fits(t, hidden_p):
            tm, th = t, hidden_p
            break
    # 2) otherwise split the hidden dim; prefer the largest token tile first
    #    (weight re-stream traffic scales with N / tm).
    if tm is None:
        th_cands = [c for c in (2048, 1024, 512, 256, 128)
                    if c < hidden_p and hidden_p % c == 0]
        for t in _tm_candidates(tm0, row_align):
            for c in th_cands:
                if fits(t, c):
                    tm, th = t, c
                    break
            if tm is not None:
                break
    if tm is None:              # last resort: smallest legal tiles
        tm, th = row_align, 128

    # 3) on v7x make sure grid axis 0 ("parallel") has >= 2 steps so both
    #    TensorCores get work.
    if is_v7:
        while pl.cdiv(N, tm) < 2 and tm // 2 >= row_align and N > row_align:
            new_tm = max(row_align, _round_up(tm // 2, row_align))
            if new_tm == tm:
                break
            tm = new_tm
            if tm == row_align:
                break

    n_pad = _round_up(N, tm)
    num_i = n_pad // tm
    num_k = hidden_p // th
    n_sub = th // _pick_chunk(th)

    # --- pad / cast the token axis (padded rows produce finite junk, sliced off) ---
    x2 = x.reshape(N, dim).astype(stream_dtype)
    if dim_p != dim or n_pad != N:
        x2 = jnp.pad(x2, ((0, n_pad - N), (0, dim_p - dim)))

    kernel = functools.partial(_ff_kernel, eps=eps, true_dim=dim,
                               compute_dtype=matmul_dtype, n_sub=n_sub)

    grid_spec = pltpu.PrefetchScalarGridSpec(
        num_scalar_prefetch=0,
        grid=(num_i, num_k),
        in_specs=[
            pl.BlockSpec((tm, dim_p), lambda i, k: (i, 0)),    # x tile
            pl.BlockSpec((1, dim_p), lambda i, k: (0, 0)),     # LN gamma
            pl.BlockSpec((1, dim_p), lambda i, k: (0, 0)),     # LN beta
            pl.BlockSpec((dim_p, th), lambda i, k: (0, k)),    # W1 tile
            pl.BlockSpec((1, th), lambda i, k: (0, k)),        # b1 tile
            pl.BlockSpec((th, out_p), lambda i, k: (k, 0)),    # W2 tile
            pl.BlockSpec((1, out_p), lambda i, k: (0, 0)),     # b2
        ],
        out_specs=pl.BlockSpec((tm, out_p), lambda i, k: (i, 0)),
        scratch_shapes=[
            pltpu.VMEM((tm, dim_p), matmul_dtype),   # cached normalized x
            pltpu.VMEM((tm, out_p), jnp.float32),    # f32 accumulator (seeded with b2)
        ],
    )

    y2 = pl.pallas_call(
        kernel,
        out_shape=jax.ShapeDtypeStruct((n_pad, out_p), out_dtype),
        grid_spec=grid_spec,
        compiler_params=pltpu.CompilerParams(
            dimension_semantics=("parallel", "arbitrary"),
            vmem_limit_bytes=int(vmem_limit),
        ),
    )(x2, gammac, betac, w1c, b1c, w2c, b2c)

    return y2[:N, :out_dim].reshape(B, S, out_dim)


def init_params(key, dim, hidden_dim, output_dim):
    """Deterministic synthetic params. Linear weights stored pre-transposed (in, out)."""
    k1, k2, k3, k4 = jax.random.split(key, 4)
    gamma = jnp.ones((1, dim), jnp.float32)   # nn.LayerNorm default weight
    beta = jnp.zeros((1, dim), jnp.float32)   # nn.LayerNorm default bias
    w1 = jax.random.normal(k1, (dim, hidden_dim), jnp.float32) * (dim ** -0.5)
    b1 = jax.random.normal(k2, (1, hidden_dim), jnp.float32) * 0.02
    w2 = jax.random.normal(k3, (hidden_dim, output_dim), jnp.float32) * (hidden_dim ** -0.5)
    b2 = jax.random.normal(k4, (1, output_dim), jnp.float32) * 0.02
    return (gamma, beta, w1, b1, w2, b2)


def feed_forward_ref(x, params, eps=1e-5):
    """Pure-JAX reference of the PyTorch module (dropout p=0 => identity)."""
    gamma, beta, w1, b1, w2, b2 = params
    mu = jnp.mean(x, axis=-1, keepdims=True)
    var = jnp.mean((x - mu) ** 2, axis=-1, keepdims=True)
    xn = (x - mu) * jax.lax.rsqrt(var + eps) * gamma[0] + beta[0]
    h = jax.nn.gelu(jnp.dot(xn, w1, precision=jax.lax.Precision.HIGHEST) + b1[0],
                    approximate=False)
    return jnp.dot(h, w2, precision=jax.lax.Precision.HIGHEST) + b2[0]


if __name__ == "__main__":
    # Small shapes consistent with the module: batch=2, seq=8, dim=128, hidden=256.
    B, S, dim, hidden_dim, output_dim = 2, 8, 128, 256, 128

    key = jax.random.PRNGKey(0)
    kx, kp = jax.random.split(key)
    x = jax.random.normal(kx, (B, S, dim), jnp.float32)
    params = init_params(kp, dim, hidden_dim, output_dim)

    y_ref = feed_forward_ref(x, params)

    # f32 MXU path: close to the f32 PyTorch module.
    y_f32 = jax.block_until_ready(feed_forward(x, params, matmul_dtype=jnp.float32))
    assert y_f32.shape == (B, S, output_dim)
    assert jnp.allclose(y_f32, y_ref, atol=2e-3, rtol=2e-3), "f32 path mismatch"

    # bf16-operand / f32-accumulate path (default, fast on the MXU).
    y_bf16 = jax.block_until_ready(feed_forward(x, params))
    assert y_bf16.shape == (B, S, output_dim)
    assert jnp.allclose(y_bf16, y_ref, atol=5e-2, rtol=5e-2), "bf16 path mismatch"

    print("KERNEL_OK")
</pallas_src>

<mosaic_0001>
module attributes {stable_mosaic.version = 11 : i64} {
  func.func @_ff_kernel(%arg0: i32, %arg1: i32, %arg2: memref<16x128xf32, #tpu.memory_space<vmem>>, %arg3: memref<1x128xf32, #tpu.memory_space<vmem>>, %arg4: memref<1x128xf32, #tpu.memory_space<vmem>>, %arg5: memref<128x256xf32, #tpu.memory_space<vmem>>, %arg6: memref<1x256xf32, #tpu.memory_space<vmem>>, %arg7: memref<256x128xf32, #tpu.memory_space<vmem>>, %arg8: memref<1x128xf32, #tpu.memory_space<vmem>>, %arg9: memref<16x128xf32, #tpu.memory_space<vmem>>, %arg10: memref<16x128xf32, #tpu.memory_space<vmem>>, %arg11: memref<16x128xf32, #tpu.memory_space<vmem>>) attributes {dimension_semantics = [#tpu.dimension_semantics<parallel>, #tpu.dimension_semantics<arbitrary>], iteration_bounds = array<i64: 1, 1>, scalar_prefetch = 0 : i64, scratch_operands = 2 : i64, tpu.core_type = #tpu.core_type<tc>, window_params = [{transform_indices = @transform_0, window_bounds = array<i64: 16, 128>}, {pipeline_mode = #tpu.pipeline_mode<synchronous>, transform_indices = @transform_1, window_bounds = array<i64: 1, 128>}, {pipeline_mode = #tpu.pipeline_mode<synchronous>, transform_indices = @transform_2, window_bounds = array<i64: 1, 128>}, {transform_indices = @transform_3, window_bounds = array<i64: 128, 256>}, {transform_indices = @transform_4, window_bounds = array<i64: 1, 256>}, {transform_indices = @transform_5, window_bounds = array<i64: 256, 128>}, {pipeline_mode = #tpu.pipeline_mode<synchronous>, transform_indices = @transform_6, window_bounds = array<i64: 1, 128>}, {transform_indices = @transform_7, window_bounds = array<i64: 16, 128>}]} {
    %c0_i32 = arith.constant 0 : i32
    %0 = arith.cmpi eq, %arg1, %c0_i32 : i32
    %1 = arith.extui %0 : i1 to i32
    %c0_i32_0 = arith.constant 0 : i32
    %2 = arith.cmpi ne, %1, %c0_i32_0 : i32
    scf.if %2 {
      %c0_28 = arith.constant 0 : index
      %c0_29 = arith.constant 0 : index
      %62 = vector.load %arg2[%c0_28, %c0_29] : memref<16x128xf32, #tpu.memory_space<vmem>>, vector<16x128xf32>
      %cst_30 = arith.constant dense<0.000000e+00> : vector<16xf32>
      %63 = vector.multi_reduction <add>, %62, %cst_30 [1] : vector<16x128xf32> to vector<16xf32>
      %64 = vector.shape_cast %63 : vector<16xf32> to vector<16x1xf32>
      %cst_31 = arith.constant 1.280000e+02 : f32
      %65 = vector.broadcast %cst_31 : f32 to vector<16x1xf32>
      %66 = arith.divf %64, %65 : vector<16x1xf32>
      %67 = vector.broadcast %66 : vector<16x1xf32> to vector<16x128xf32>
      %68 = arith.subf %62, %67 : vector<16x128xf32>
      %69 = arith.mulf %68, %68 : vector<16x128xf32>
      %cst_32 = arith.constant dense<0.000000e+00> : vector<16xf32>
      %70 = vector.multi_reduction <add>, %69, %cst_32 [1] : vector<16x128xf32> to vector<16xf32>
      %71 = vector.shape_cast %70 : vector<16xf32> to vector<16x1xf32>
      %cst_33 = arith.constant 1.280000e+02 : f32
      %72 = vector.broadcast %cst_33 : f32 to vector<16x1xf32>
      %73 = arith.divf %71, %72 : vector<16x1xf32>
      %cst_34 = arith.constant 9.99999974E-6 : f32
      %74 = vector.broadcast %cst_34 : f32 to vector<16x1xf32>
      %75 = arith.addf %73, %74 : vector<16x1xf32>
      %76 = math.rsqrt %75 : vector<16x1xf32>
      %77 = vector.broadcast %76 : vector<16x1xf32> to vector<16x128xf32>
      %78 = arith.mulf %68, %77 : vector<16x128xf32>
      %c0_35 = arith.constant 0 : index
      %c0_36 = arith.constant 0 : index
      %79 = vector.load %arg3[%c0_35, %c0_36] : memref<1x128xf32, #tpu.memory_space<vmem>>, vector<1x128xf32>
      %80 = vector.broadcast %79 : vector<1x128xf32> to vector<16x128xf32>
      %81 = arith.mulf %78, %80 : vector<16x128xf32>
      %c0_37 = arith.constant 0 : index
      %c0_38 = arith.constant 0 : index
      %82 = vector.load %arg4[%c0_37, %c0_38] : memref<1x128xf32, #tpu.memory_space<vmem>>, vector<1x128xf32>
      %83 = vector.broadcast %82 : vector<1x128xf32> to vector<16x128xf32>
      %84 = arith.addf %81, %83 : vector<16x128xf32>
      %c0_39 = arith.constant 0 : index
      %c0_40 = arith.constant 0 : index
      %85 = vector.load %arg10[%c0_39, %c0_40] : memref<16x128xf32, #tpu.memory_space<vmem>>, vector<16x128xf32>
      tpu.vector_store %arg10[%c0_39, %c0_40], %84 {strides = array<i32>} : memref<16x128xf32, #tpu.memory_space<vmem>>, vector<16x128xf32>,
      %c0_41 = arith.constant 0 : index
      %c0_42 = arith.constant 0 : index
      %86 = vector.load %arg8[%c0_41, %c0_42] : memref<1x128xf32, #tpu.memory_space<vmem>>, vector<1x128xf32>
      %87 = vector.shape_cast %86 : vector<1x128xf32> to vector<1x128xf32>
      %88 = vector.broadcast %87 : vector<1x128xf32> to vector<16x128xf32>
      %c0_43 = arith.constant 0 : index
      %c0_44 = arith.constant 0 : index
      %89 = vector.load %arg11[%c0_43, %c0_44] : memref<16x128xf32, #tpu.memory_space<vmem>>, vector<16x128xf32>
      tpu.vector_store %arg11[%c0_43, %c0_44], %88 {strides = array<i32>} : memref<16x128xf32, #tpu.memory_space<vmem>>, vector<16x128xf32>,
    } else {
    }
    %c0_i32_1 = arith.constant 0 : i32
    %c256_i32 = arith.constant 256 : i32
    %3 = arith.muli %c0_i32_1, %c256_i32 : i32
    %4 = tpu.assume_multiple %3, 128 : i32
    %c0 = arith.constant 0 : index
    %c0_2 = arith.constant 0 : index
    %5 = vector.load %arg10[%c0, %c0_2] : memref<16x128xf32, #tpu.memory_space<vmem>>, vector<16x128xf32>
    %c0_3 = arith.constant 0 : index
    %6 = arith.index_cast %4 : i32 to index
    %7 = vector.load %arg5[%c0_3, %6] : memref<128x256xf32, #tpu.memory_space<vmem>>, vector<128x256xf32>
    %cst = arith.constant dense<0.000000e+00> : vector<16x256xf32>
    %8 = tpu.matmul %5, %7, %cst {dimension_numbers = #tpu.dot_dimension_numbers<[1], [0], [0], [1], [0, 0, 1, 1], [], []>} : vector<16x128xf32>, vector<128x256xf32>, vector<16x256xf32> -> vector<16x256xf32>
    %c0_4 = arith.constant 0 : index
    %9 = arith.index_cast %4 : i32 to index
    %10 = vector.load %arg6[%c0_4, %9] : memref<1x256xf32, #tpu.memory_space<vmem>>, vector<1x256xf32>
    %11 = vector.broadcast %10 : vector<1x256xf32> to vector<16x256xf32>
    %12 = arith.addf %8, %11 : vector<16x256xf32>
    %cst_5 = arith.constant 0.707106769 : f32
    %13 = vector.broadcast %cst_5 : f32 to vector<16x256xf32>
    %14 = arith.mulf %12, %13 : vector<16x256xf32>
    %15 = math.absf %14 : vector<16x256xf32>
    %cst_6 = arith.constant 0.327591091 : f32
    %16 = vector.broadcast %cst_6 : f32 to vector<16x256xf32>
    %17 = arith.mulf %16, %15 : vector<16x256xf32>
    %cst_7 = arith.constant 1.000000e+00 : f32
    %18 = vector.broadcast %cst_7 : f32 to vector<16x256xf32>
    %19 = arith.addf %18, %17 : vector<16x256xf32>
    %cst_8 = arith.constant 1.000000e+00 : f32
    %20 = vector.broadcast %cst_8 : f32 to vector<16x256xf32>
    %21 = arith.divf %20, %19 : vector<16x256xf32>
    %cst_9 = arith.constant 1.06140542 : f32
    %22 = vector.broadcast %cst_9 : f32 to vector<16x256xf32>
    %23 = arith.mulf %21, %22 : vector<16x256xf32>
    %cst_10 = arith.constant -1.45315206 : f32
    %24 = vector.broadcast %cst_10 : f32 to vector<16x256xf32>
    %25 = arith.addf %24, %23 : vector<16x256xf32>
    %26 = arith.mulf %21, %25 : vector<16x256xf32>
    %cst_11 = arith.constant 1.42141378 : f32
    %27 = vector.broadcast %cst_11 : f32 to vector<16x256xf32>
    %28 = arith.addf %27, %26 : vector<16x256xf32>
    %29 = arith.mulf %21, %28 : vector<16x256xf32>
    %cst_12 = arith.constant -0.284496725 : f32
    %30 = vector.broadcast %cst_12 : f32 to vector<16x256xf32>
    %31 = arith.addf %30, %29 : vector<16x256xf32>
    %32 = arith.mulf %21, %31 : vector<16x256xf32>
    %cst_13 = arith.constant 0.254829586 : f32
    %33 = vector.broadcast %cst_13 : f32 to vector<16x256xf32>
    %34 = arith.addf %33, %32 : vector<16x256xf32>
    %35 = arith.mulf %21, %34 : vector<16x256xf32>
    %36 = arith.mulf %15, %15 : vector<16x256xf32>
    %cst_14 = arith.constant 0.000000e+00 : f32
    %37 = vector.broadcast %cst_14 : f32 to vector<16x256xf32>
    %38 = arith.subf %37, %36 : vector<16x256xf32>
    %39 = math.exp %38 : vector<16x256xf32>
    %40 = arith.mulf %35, %39 : vector<16x256xf32>
    %cst_15 = arith.constant 1.000000e+00 : f32
    %41 = vector.broadcast %cst_15 : f32 to vector<16x256xf32>
    %42 = arith.subf %41, %40 : vector<16x256xf32>
    %cst_16 = arith.constant 0.000000e+00 : f32
    %43 = vector.broadcast %cst_16 : f32 to vector<16x256xf32>
    %44 = arith.cmpf olt, %14, %43 : vector<16x256xf32>
    %cst_17 = arith.constant 0.000000e+00 : f32
    %45 = vector.broadcast %cst_17 : f32 to vector<16x256xf32>
    %46 = arith.subf %45, %42 : vector<16x256xf32>
    %47 = arith.select %44, %46, %42 : vector<16x256xi1>, vector<16x256xf32>
    %cst_18 = arith.constant 5.000000e-01 : f32
    %48 = vector.broadcast %cst_18 : f32 to vector<16x256xf32>
    %49 = arith.mulf %48, %12 : vector<16x256xf32>
    %cst_19 = arith.constant 1.000000e+00 : f32
    %50 = vector.broadcast %cst_19 : f32 to vector<16x256xf32>
    %51 = arith.addf %50, %47 : vector<16x256xf32>
    %52 = arith.mulf %49, %51 : vector<16x256xf32>
    %c0_20 = arith.constant 0 : index
    %c0_21 = arith.constant 0 : index
    %53 = vector.load %arg11[%c0_20, %c0_21] : memref<16x128xf32, #tpu.memory_space<vmem>>, vector<16x128xf32>
    %54 = arith.index_cast %4 : i32 to index
    %c0_22 = arith.constant 0 : index
    %55 = vector.load %arg7[%54, %c0_22] : memref<256x128xf32, #tpu.memory_space<vmem>>, vector<256x128xf32>
    %cst_23 = arith.constant dense<0.000000e+00> : vector<16x128xf32>
    %56 = tpu.matmul %52, %55, %cst_23 {dimension_numbers = #tpu.dot_dimension_numbers<[1], [0], [0], [1], [0, 0, 1, 1], [], []>} : vector<16x256xf32>, vector<256x128xf32>, vector<16x128xf32> -> vector<16x128xf32>
    %57 = arith.addf %53, %56 : vector<16x128xf32>
    %c0_24 = arith.constant 0 : index
    %c0_25 = arith.constant 0 : index
    %58 = vector.load %arg11[%c0_24, %c0_25] : memref<16x128xf32, #tpu.memory_space<vmem>>, vector<16x128xf32>
    tpu.vector_store %arg11[%c0_24, %c0_25], %57 {strides = array<i32>} : memref<16x128xf32, #tpu.memory_space<vmem>>, vector<16x128xf32>,
    %c1_i32 = arith.constant 1 : i32
    %c0_i32_26 = arith.constant 0 : i32
    %59 = arith.cmpi eq, %arg1, %c0_i32_26 : i32
    %60 = arith.extui %59 : i1 to i32
    %c0_i32_27 = arith.constant 0 : i32
    %61 = arith.cmpi ne, %60, %c0_i32_27 : i32
    scf.if %61 {
      %c0_28 = arith.constant 0 : index
      %c0_29 = arith.constant 0 : index
      %62 = vector.load %arg11[%c0_28, %c0_29] : memref<16x128xf32, #tpu.memory_space<vmem>>, vector<16x128xf32>
      %c0_30 = arith.constant 0 : index
      %c0_31 = arith.constant 0 : index
      %63 = vector.load %arg9[%c0_30, %c0_31] : memref<16x128xf32, #tpu.memory_space<vmem>>, vector<16x128xf32>
      tpu.vector_store %arg9[%c0_30, %c0_31], %62 {strides = array<i32>} : memref<16x128xf32, #tpu.memory_space<vmem>>, vector<16x128xf32>,
    } else {
    }
    return
  }
  func.func @transform_0(%arg0: i32, %arg1: i32) -> (i32, i32) {
    %c0_i32 = arith.constant 0 : i32
    %c0_i32_0 = arith.constant 0 : i32
    return %arg0, %c0_i32 : i32, i32
  }
  func.func @transform_1(%arg0: i32, %arg1: i32) -> (i32, i32) {
    %c0_i32 = arith.constant 0 : i32
    %c0_i32_0 = arith.constant 0 : i32
    %c0_i32_1 = arith.constant 0 : i32
    return %c0_i32, %c0_i32_0 : i32, i32
  }
  func.func @transform_2(%arg0: i32, %arg1: i32) -> (i32, i32) {
    %c0_i32 = arith.constant 0 : i32
    %c0_i32_0 = arith.constant 0 : i32
    %c0_i32_1 = arith.constant 0 : i32
    return %c0_i32, %c0_i32_0 : i32, i32
  }
  func.func @transform_3(%arg0: i32, %arg1: i32) -> (i32, i32) {
    %c0_i32 = arith.constant 0 : i32
    %c0_i32_0 = arith.constant 0 : i32
    return %c0_i32, %arg1 : i32, i32
  }
  func.func @transform_4(%arg0: i32, %arg1: i32) -> (i32, i32) {
    %c0_i32 = arith.constant 0 : i32
    %c0_i32_0 = arith.constant 0 : i32
    return %c0_i32, %arg1 : i32, i32
  }
  func.func @transform_5(%arg0: i32, %arg1: i32) -> (i32, i32) {
    %c0_i32 = arith.constant 0 : i32
    %c0_i32_0 = arith.constant 0 : i32
    return %arg1, %c0_i32 : i32, i32
  }
  func.func @transform_6(%arg0: i32, %arg1: i32) -> (i32, i32) {
    %c0_i32 = arith.constant 0 : i32
    %c0_i32_0 = arith.constant 0 : i32
    %c0_i32_1 = arith.constant 0 : i32
    return %c0_i32, %c0_i32_0 : i32, i32
  }
  func.func @transform_7(%arg0: i32, %arg1: i32) -> (i32, i32) {
    %c0_i32 = arith.constant 0 : i32
    %c0_i32_0 = arith.constant 0 : i32
    return %arg0, %c0_i32 : i32, i32
  }
}

</mosaic_0001>

<bundles_post_ra>
// kernel: tpu_custom_call.1
= control target key start
LH: loop header
LB: loop body
LE: loop exit
PB: predicated region body
PF: predicated region fallthrough
CT: control target
= control target key end

     0   :  { %12 = vsyncpa [#allocation5], 0  ;;  %s812_s0 = inlined_call_operand.hbm [shape: f32[16,128], index: 0, kind: input, shape index: {}]   ;;  %s813_s1 = inlined_call_operand.vmem [shape: f32[1,128], index: 1, kind: input, shape index: {}]   ;;  %s814_s2 = inlined_call_operand.hbm [shape: f32[1,128], index: 2, kind: input, shape index: {}]   ;;  %s815_s3 = inlined_call_operand.hbm [shape: f32[128,256], index: 3, kind: input, shape index: {}]   ;;  %s816_s4 = inlined_call_operand.vmem [shape: f32[1,256], index: 4, kind: input, shape index: {}]   ;;  %s817_s5 = inlined_call_operand.hbm [shape: f32[256,128], index: 5, kind: input, shape index: {}]   ;;  %s818_s6 = inlined_call_operand.vmem [shape: f32[1,128], index: 6, kind: input, shape index: {}]   ;;  %s819_s7 = inlined_call_operand.hbm [shape: f32[16,128], index: 7, kind: output, shape index: {}]  }
   0x1   :  { %13 = vsyncpa [#allocation8], 0 }
   0x2   :  { %14 = vsyncpa [#allocation11], 0 }
   0x3   :  { %15 = vsyncpa [#allocation6], 0  ;;  %s687_s24 = smov [#allocation7]   ;;  %s688_s26 = smov [#allocation4]  }
   0x4   :  { %s36_s25 = sshll.u32 %s687_s24, 4  ;;  %s21_s27 = sshll.u32 %s688_s26, 4  ;;  %s37_s25 = int_to_ptr.vmem [resolvable:$true] %s36_s25  ;;  %s22_s27 = int_to_ptr.vmem [resolvable:$true] %s21_s27 }
   0x5   :  { %s587_s28 = scalar_lea.vmem %s37_s25, 16  ;;  %s591_s29 = scalar_lea.vmem %s37_s25, 32 }
   0x6   :  { %p588_p0 = scmp.ne.s32.totalorder %s37_s25, %s587_s28  ;;  %p592_p1 = scmp.lt.s32.totalorder %s37_s25, %s37_s25 }
   0x7   :  { %p593_p2 = scmp.lt.s32.totalorder %s591_s29, %s587_s28 }
   0x9   :  { %p594_p3 = por %p593_p2, %p592_p1 }
   0xb   :  { %p595_p4 = pnand %p594_p3, %p588_p0 }
   0xd   :  { %598 = shalt.err (!%p595_p4)
}
   0xe   :  { %39 = dma.hbm_to_vmem [thread:$0]  %s814_s2, 16, %s37_s25, [#allocation8]  }
   0xf   :  { %s607_s9 = scalar_lea.vmem %s22_s27, 256  ;;  %p612_p6 = scmp.lt.s32.totalorder %s22_s27, %s22_s27 }
  0x10   :  { %p608_p5 = scmp.ne.s32.totalorder %s22_s27, %s607_s9  ;;  %p613_p7 = scmp.lt.s32.totalorder %s607_s9, %s607_s9 }
  0x12   :  { %p614_p8 = por %p613_p7, %p612_p6 }
  0x14   :  { %p615_p9 = pnand %p614_p8, %p608_p5 }
  0x16   :  { %618 = shalt.err (!%p615_p9)
}
  0x17   :  { %s689_s10 = smov 128   ;;  %s690_s11 = smov 8  }
  0x18   :  { %27 = dma.hbm_to_vmem [thread:$0]  %s812_s0, 256, %s22_s27, [#allocation5], %s689_s10, %s689_s10, %s690_s11  }
  0x19   :  { %s691_s14 = smov [#allocation9]  }
  0x1a   :  { %s45_s15 = sshll.u32 %s691_s14, 4  ;;  %s46_s15 = int_to_ptr.vmem [resolvable:$true] %s45_s15 }
  0x1b   :  { %s627_s2 = scalar_lea.vmem %s46_s15, 4096  ;;  %p632_p11 = scmp.lt.s32.totalorder %s46_s15, %s46_s15 }
  0x1c   :  { %p628_p10 = scmp.ne.s32.totalorder %s46_s15, %s627_s2  ;;  %p633_p12 = scmp.lt.s32.totalorder %s627_s2, %s627_s2 }
  0x1e   :  { %p634_p13 = por %p633_p12, %p632_p11 }
  0x20   :  { %p635_p0 = pnand %p634_p13, %p628_p10 }
  0x22   :  { %638 = shalt.err (!%p635_p0)
}
  0x23   :  { %s692_s16 = smov 256   ;;  %s693_s17 = smov 16  }
  0x24   :  { %51 = dma.hbm_to_vmem [thread:$0]  %s815_s3, 4096, %s46_s15, [#allocation8], %s692_s16, %s692_s16, %s693_s17  }
  0x25   :  { %s694_s20 = smov [#allocation10]  }
  0x26   :  { %s59_s21 = sshll.u32 %s694_s20, 4  ;;  %s60_s21 = int_to_ptr.vmem [resolvable:$true] %s59_s21 }
  0x27   :  { %s647_s0 = scalar_lea.vmem %s60_s21, 4096  ;;  %p652_p2 = scmp.lt.s32.totalorder %s60_s21, %s60_s21 }
  0x28   :  { %p648_p1 = scmp.ne.s32.totalorder %s60_s21, %s647_s0  ;;  %p653_p3 = scmp.lt.s32.totalorder %s647_s0, %s647_s0 }
  0x2a   :  { %p654_p4 = por %p653_p3, %p652_p2 }
  0x2c   :  { %p655_p5 = pnand %p654_p4, %p648_p1 }
  0x2e   :  { %658 = shalt.err (!%p655_p5)
}
  0x2f   :  { %65 = dma.hbm_to_vmem [thread:$0]  %s817_s5, 4096, %s60_s21, [#allocation11], %s689_s10, %s689_s10, %s690_s11  }
  0x30   :  { %679 = dma.done.wait [#allocation5], 256  }
  0x31   :  { %680 = vsyncadd [#allocation5], 4294967040 }
  0x32   :  { %681 = dma.done.wait [#allocation8], 4112  }
  0x33   :  { %682 = vsyncadd [#allocation8], 4294963184 }
  0x34   :  { %683 = dma.done.wait [#allocation11], 4096  }
  0x35   :  { %684 = vsyncadd [#allocation11], 4294963200  ;;  %v84_v0 = vld [vmem:[#allocation4] sm:$0xff]  ;;  %v85_v1 = vld [vmem:[#allocation4 + $0x8] sm:$0xff]  ;;  %v695_v31 = vmov 0.0   ;;  %s696_s26 = smov [#allocation12]  }
  0x36   :  { %86 = vadd.xlane.f32.xlu0 %v84_v0  ;;  %v171_v2 = vld [vmem:[#allocation9 + $0xf8] sm:$0xff]  ;;  %v170_v3 = vld [vmem:[#allocation9 + $0xf0] sm:$0xff]  ;;  %v169_v4 = vld [vmem:[#allocation9 + $0xe8] sm:$0xff]  ;;  %248 = vmatprep.mubr.f32.mxu0 %v695_v31  ;;  %s494_s27 = sshll.u32 %s696_s26, 4  ;;  %s495_s27 = int_to_ptr.vmem [resolvable:$true] %s494_s27 }
  0x37   :  { %184 = vmatprep.subr.mxu0 %v171_v2  ;;  %v168_v5 = vld [vmem:[#allocation9 + $0xe0] sm:$0xff]  ;;  %v167_v6 = vld [vmem:[#allocation9 + $0xd8] sm:$0xff]  ;;  %v166_v7 = vld [vmem:[#allocation9 + $0xd0] sm:$0xff]  ;;  %s659_s28 = scalar_lea.vmem %s495_s27, 256  ;;  %p664_p7 = scmp.lt.s32.totalorder %s495_s27, %s495_s27 }
  0x38   :  { %185 = vmatpush1.msra.mxu0 %v170_v3  ;;  %v165_v8 = vld [vmem:[#allocation9 + $0xc8] sm:$0xff]  ;;  %v164_v9 = vld [vmem:[#allocation9 + $0xc0] sm:$0xff]  ;;  %v163_v18 = vld [vmem:[#allocation9 + $0xb8] sm:$0xff]  ;;  %p660_p6 = scmp.ne.s32.totalorder %s495_s27, %s659_s28  ;;  %p665_p8 = scmp.lt.s32.totalorder %s659_s28, %s659_s28 }
  0x39   :  { %186 = vmatprep.subr.mxu0 %v169_v4  ;;  %v162_v19 = vld [vmem:[#allocation9 + $0xb0] sm:$0xff]  ;;  %v161_v20 = vld [vmem:[#allocation9 + $0xa8] sm:$0xff]  ;;  %v160_v21 = vld [vmem:[#allocation9 + $0xa0] sm:$0xff] }
  0x3a   :  { %88 = vadd.xlane.f32.xlu0 %v85_v1  ;;  %187 = vmatpush1.msra.mxu0 %v168_v5  ;;  %v159_v22 = vld [vmem:[#allocation9 + $0x98] sm:$0xff]  ;;  %v158_v23 = vld [vmem:[#allocation9 + $0x90] sm:$0xff]  ;;  %v157_v24 = vld [vmem:[#allocation9 + $0x88] sm:$0xff]  ;;  %p666_p9 = por %p665_p8, %p664_p7 }
  0x3b   :  { %188 = vmatprep.subr.mxu0 %v167_v6  ;;  %v156_v25 = vld [vmem:[#allocation9 + $0x80] sm:$0xff]  ;;  %v155_v26 = vld [vmem:[#allocation9 + $0x78] sm:$0xff]  ;;  %v154_v27 = vld [vmem:[#allocation9 + $0x70] sm:$0xff] }
  0x3c   :  { %189 = vmatpush1.msra.mxu0 %v166_v7  ;;  %v153_v28 = vld [vmem:[#allocation9 + $0x68] sm:$0xff]  ;;  %v152_v29 = vld [vmem:[#allocation9 + $0x60] sm:$0xff]  ;;  %v151_v30 = vld [vmem:[#allocation9 + $0x58] sm:$0xff]  ;;  %p667_p10 = pnand %p666_p9, %p660_p6 }
  0x3d   :  { %190 = vmatprep.subr.mxu0 %v165_v8  ;;  %v150_v32 = vld [vmem:[#allocation9 + $0x50] sm:$0xff]  ;;  %v149_v33 = vld [vmem:[#allocation9 + $0x48] sm:$0xff]  ;;  %v148_v34 = vld [vmem:[#allocation9 + $0x40] sm:$0xff] }
  0x3e   :  { %191 = vmatpush1.msra.mxu0 %v164_v9  ;;  %v147_v35 = vld [vmem:[#allocation9 + $0x38] sm:$0xff]  ;;  %v146_v36 = vld [vmem:[#allocation9 + $0x30] sm:$0xff]  ;;  %v145_v37 = vld [vmem:[#allocation9 + $0x28] sm:$0xff] }
  0x3f   :  { %192 = vmatprep.subr.mxu0 %v163_v18  ;;  %v144_v38 = vld [vmem:[#allocation9 + $0x20] sm:$0xff]  ;;  %v143_v39 = vld [vmem:[#allocation9 + $0x18] sm:$0xff]  ;;  %v142_v40 = vld [vmem:[#allocation9 + $0x10] sm:$0xff] }
  0x40   :  { %193 = vmatpush1.msra.mxu0 %v162_v19  ;;  %v141_v41 = vld [vmem:[#allocation9 + $0x8] sm:$0xff]  ;;  %v140_v42 = vld [vmem:[#allocation9] sm:$0xff]  ;;  %v509_v52 = vld [vmem:[#allocation7] ss:$0 sm:$0xff] }
  0x41   :  { %194 = vmatprep.subr.mxu0 %v161_v20  ;;  %v508_v50 = vld [vmem:[%s813_s1] ss:$0 sm:$0xff]  ;;  %v402_v59 = vld [vmem:[#allocation10 + $0xf8] sm:$0xff]  ;;  %v401_v61 = vld [vmem:[#allocation10 + $0xf0] sm:$0xff] }
  0x42   :  { %195 = vmatpush1.msra.mxu0 %v160_v21  ;;  %v386_v60 = vld [vmem:[#allocation10 + $0x78] sm:$0xff]  ;;  %511 = vmatprep.subr.mxu1 %v402_v59  ;;  %v385_v62 = vld [vmem:[#allocation10 + $0x70] sm:$0xff]  ;;  %v400_v63 = vld [vmem:[#allocation10 + $0xe8] sm:$0xff] }
  0x43   :  { %196 = vmatprep.subr.mxu0 %v159_v22  ;;  %512 = vmatpush3.msra.mxu1 %v386_v60  ;;  %v383_v2 = vld [vmem:[#allocation10 + $0x60] sm:$0xff]  ;;  %v398_v3 = vld [vmem:[#allocation10 + $0xd8] sm:$0xff]  ;;  %v397_v5 = vld [vmem:[#allocation10 + $0xd0] sm:$0xff] }
  0x44   :  { %197 = vmatpush1.msra.mxu0 %v158_v23  ;;  %513 = vmatprep.subr.mxu1 %v401_v61  ;;  %v382_v4 = vld [vmem:[#allocation10 + $0x58] sm:$0xff]  ;;  %v381_v6 = vld [vmem:[#allocation10 + $0x50] sm:$0xff]  ;;  %v396_v7 = vld [vmem:[#allocation10 + $0xc8] sm:$0xff] }
  0x45   :  { %198 = vmatprep.subr.mxu0 %v157_v24  ;;  %514 = vmatpush3.msra.mxu1 %v385_v62  ;;  %v380_v8 = vld [vmem:[#allocation10 + $0x48] sm:$0xff]  ;;  %v395_v9 = vld [vmem:[#allocation10 + $0xc0] sm:$0xff]  ;;  %v390_v19 = vld [vmem:[#allocation10 + $0x98] sm:$0xff] }
  0x46   :  { %199 = vmatpush1.msra.mxu0 %v156_v25  ;;  %515 = vmatprep.subr.mxu1 %v400_v63  ;;  %v375_v18 = vld [vmem:[#allocation10 + $0x20] sm:$0xff]  ;;  %v374_v20 = vld [vmem:[#allocation10 + $0x18] sm:$0xff]  ;;  %v389_v21 = vld [vmem:[#allocation10 + $0x90] sm:$0xff] }
  0x47   :  { %200 = vmatprep.subr.mxu0 %v155_v26  ;;  %v373_v22 = vld [vmem:[#allocation10 + $0x10] sm:$0xff]  ;;  %v388_v23 = vld [vmem:[#allocation10 + $0x88] sm:$0xff]  ;;  %v387_v25 = vld [vmem:[#allocation10 + $0x80] sm:$0xff] }
  0x48   :  { %201 = vmatpush1.msra.mxu0 %v154_v27  ;;  %v372_v24 = vld [vmem:[#allocation10 + $0x8] sm:$0xff]  ;;  %v371_v26 = vld [vmem:[#allocation10] sm:$0xff]  ;;  %v174_v27 = vlaneseq }
  0x49   :  { %202 = vmatprep.subr.mxu0 %v153_v28 }
  0x4a   :  { %203 = vmatpush1.msra.mxu0 %v152_v29  ;;  %v175_v28 = vshrl.u32 %v174_v27, 7 }
  0x4b   :  { %204 = vmatprep.subr.mxu0 %v151_v30  ;;  %v172_v30 = vld [vmem:[%s816_s4] sm:$0x3] }
  0x4c   :  { %205 = vmatpush1.msra.mxu0 %v150_v32  ;;  %v176_v29 = vsub.s32 0, %v175_v28 }
  0x4d   :  { %206 = vmatprep.subr.mxu0 %v149_v33 }
  0x4e   :  { %207 = vmatpush1.msra.mxu0 %v148_v34  ;;  %v177_v32 = vrot.slane %v172_v30, %v176_v29 }
  0x4f   :  { %208 = vmatprep.subr.mxu0 %v147_v35 }
  0x50   :  { %209 = vmatpush1.msra.mxu0 %v146_v36 }
  0x51   :  { %210 = vmatprep.subr.mxu0 %v145_v37 }
  0x52   :  { %211 = vmatpush1.msra.mxu0 %v144_v38 }
  0x53   :  { %212 = vmatprep.subr.mxu0 %v143_v39 }
  0x54   :  { %213 = vmatpush1.msra.mxu0 %v142_v40 }
  0x55   :  { %214 = vmatprep.subr.mxu0 %v141_v41 }
  0x56   :  { %215 = vmatpush1.msra.mxu0 %v140_v42 }
  0xbf   :  { %v87_v10 = vpop.xlane.xlu0 %86 }
  0xc0   :  { %v91_v11 = vmul.f32 0.0078125, %v87_v10  ;;  %v379_v10 = vld [vmem:[#allocation10 + $0x40] sm:$0xff] }
  0xc2   :  { %v755_v12 = vsub.f32 %v84_v0, %v91_v11  ;;  %v384_v0 = vld [vmem:[#allocation10 + $0x68] sm:$0xff]  ;;  %v394_v11 = vld [vmem:[#allocation10 + $0xb8] sm:$0xff] }
  0xc3   :  { %v89_v13 = vpop.xlane.xlu0 %88  ;;  %516 = vmatpush3.msra.mxu1 %v384_v0 }
  0xc4   :  { %v92_v14 = vmul.f32 0.0078125, %v89_v13  ;;  %v95_v15 = vmul.f32 %v755_v12, %v755_v12  ;;  %v393_v13 = vld [vmem:[#allocation10 + $0xb0] sm:$0xff] }
  0xc6   :  { %v759_v16 = vsub.f32 %v85_v1, %v92_v14  ;;  %97 = vadd.xlane.f32.xlu1 %v95_v15  ;;  %v399_v1 = vld [vmem:[#allocation10 + $0xe0] sm:$0xff]  ;;  %v377_v14 = vld [vmem:[#allocation10 + $0x30] sm:$0xff]  ;;  %v392_v15 = vld [vmem:[#allocation10 + $0xa8] sm:$0xff] }
  0xc7   :  { %517 = vmatprep.subr.mxu1 %v399_v1 }
  0xc8   :  { %v96_v17 = vmul.f32 %v759_v16, %v759_v16  ;;  %518 = vmatpush3.msra.mxu1 %v383_v2 }
  0xc9   :  { %519 = vmatprep.subr.mxu1 %v398_v3 }
  0xca   :  { %99 = vadd.xlane.f32.xlu1 %v96_v17  ;;  %520 = vmatpush3.msra.mxu1 %v382_v4  ;;  %v391_v17 = vld [vmem:[#allocation10 + $0xa0] sm:$0xff] }
  0xcb   :  { %521 = vmatprep.subr.mxu1 %v397_v5 }
  0xcc   :  { %522 = vmatpush3.msra.mxu1 %v381_v6 }
  0xcd   :  { %523 = vmatprep.subr.mxu1 %v396_v7 }
  0xce   :  { %524 = vmatpush3.msra.mxu1 %v380_v8 }
  0xcf   :  { %525 = vmatprep.subr.mxu1 %v395_v9 }
  0xd0   :  { %526 = vmatpush3.msra.mxu1 %v379_v10 }
  0xd1   :  { %527 = vmatprep.subr.mxu1 %v394_v11 }
 0x14f   :  { %v98_v43 = vpop.xlane.xlu1 %97 }
 0x150   :  { %v101_v44 = vmul.f32 0.0078125, %v98_v43 }
 0x152   :  { %v103_v45 = vadd.f32 1e-05, %v101_v44 }
 0x153   :  { %v100_v46 = vpop.xlane.xlu1 %99 }
 0x154   :  { %559 = vrsqrt.f32 %v103_v45  ;;  %v102_v47 = vmul.f32 0.0078125, %v100_v46 }
 0x156   :  { %v104_v48 = vadd.f32 1e-05, %v102_v47 }
 0x158   :  { %561 = vrsqrt.f32 %v104_v48 }
 0x161   :  { %v560_v49 = vpop.eup %559 }
 0x162   :  { %v107_v51 = vmul.f32 %v560_v49, %v755_v12  ;;  %v378_v12 = vld [vmem:[#allocation10 + $0x38] sm:$0xff] }
 0x163   :  { %528 = vmatpush3.msra.mxu1 %v378_v12 }
 0x164   :  { %v116_v53 = vmul.f32 %v508_v50, %v107_v51  ;;  %529 = vmatprep.subr.mxu1 %v393_v13 }
 0x165   :  { %v562_v54 = vpop.eup %561  ;;  %530 = vmatpush3.msra.mxu1 %v377_v14 }
 0x166   :  { %v125_v55 = vadd.f32 %v509_v52, %v116_v53  ;;  %v108_v56 = vmul.f32 %v562_v54, %v759_v16  ;;  %v376_v16 = vld [vmem:[#allocation10 + $0x28] sm:$0xff]  ;;  %531 = vmatprep.subr.mxu1 %v392_v15 }
 0x167   :  { %532 = vmatpush3.msra.mxu1 %v376_v16 }
 0x168   :  { %249 = vmatmul.mubr.f32.vlgmr.msra.gmra.mxu0 %v125_v55  ;;  %v117_v57 = vmul.f32 %v508_v50, %v108_v56  ;;  %533 = vmatprep.subr.mxu1 %v391_v17 }
 0x169   :  { %254 = vmatprep.mubr.f32.mxu0 %v695_v31  ;;  %534 = vmatpush3.msra.mxu1 %v375_v18  ;;  %v180_v31 = vsub.s32 1, %v175_v28 }
 0x16a   :  { %v126_v58 = vadd.f32 %v509_v52, %v117_v57  ;;  %535 = vmatprep.subr.mxu1 %v390_v19 }
 0x16b   :  { %536 = vmatpush3.msra.mxu1 %v374_v20  ;;  %v181_v33 = vrot.slane %v172_v30, %v180_v31 }
 0x16c   :  { %255 = vmatmul.mubr.f32.gmra.mxu0 %v126_v58  ;;  %537 = vmatprep.subr.mxu1 %v389_v21 }
 0x16d   :  { %538 = vmatpush3.msra.mxu1 %v373_v22 }
 0x16e   :  { %539 = vmatprep.subr.mxu1 %v388_v23 }
 0x16f   :  { %540 = vmatpush3.msra.mxu1 %v372_v24 }
 0x170   :  { %541 = vmatprep.subr.mxu1 %v387_v25 }
 0x171   :  { %542 = vmatpush3.msra.mxu1 %v371_v26 }
 0x228   :  { %v250_v34 = vpop.f32.mrf.mxu0 }
 0x229   :  { %v771_v35 = vadd.f32 %v250_v34, %v177_v32 }
 0x22a   :  { %v252_v36 = vpop.f32.mrf.mxu0 }
 0x22b   :  { %v774_v37 = vmul.f32 0.70710677, %v771_v35  ;;  %v776_v38 = vadd.f32 %v252_v36, %v181_v33 }
 0x22c   :  { %v256_v39 = vpop.f32.mrf.mxu0 }
 0x22d   :  { %v265_v40 = vand.u32 2147483647, %v774_v37  ;;  %v780_v41 = vmul.f32 0.70710677, %v776_v38  ;;  %v782_v42 = vadd.f32 %v256_v39, %v177_v32  ;;  %vm345_vm0 = vcmp.lt.f32.partialorder %v774_v37, 0.0 }
 0x22e   :  { %v258_v43 = vpop.f32.mrf.mxu0  ;;  %v357_v37 = vmul.f32 0.5, %v771_v35 }
 0x22f   :  { %v269_v44 = vmul.f32 0.3275911, %v265_v40  ;;  %v266_v45 = vand.u32 2147483647, %v780_v41  ;;  %v786_v46 = vmul.f32 0.70710677, %v782_v42  ;;  %v788_v47 = vadd.f32 %v258_v43, %v181_v33 }
 0x230   :  { %v321_v58 = vmul.f32 %v265_v40, %v265_v40  ;;  %vm346_vm1 = vcmp.lt.f32.partialorder %v780_v41, 0.0 }
 0x231   :  { %v273_v48 = vadd.f32 1.0, %v269_v44  ;;  %v270_v49 = vmul.f32 0.3275911, %v266_v45  ;;  %v267_v50 = vand.u32 2147483647, %v786_v46  ;;  %v322_v59 = vmul.f32 %v266_v45, %v266_v45 }
 0x232   :  { %v792_v51 = vmul.f32 0.70710677, %v788_v47  ;;  %v325_v60 = vsub.f32 0.0, %v321_v58  ;;  %vm347_vm2 = vcmp.lt.f32.partialorder %v786_v46, 0.0  ;;  %v359_v46 = vmul.f32 0.5, %v782_v42 }
 0x233   :  { %563 = vrcp.f32 %v273_v48  ;;  %v274_v52 = vadd.f32 1.0, %v270_v49  ;;  %v271_v53 = vmul.f32 0.3275911, %v267_v50  ;;  %v323_v61 = vmul.f32 %v267_v50, %v267_v50 }
 0x234   :  { %v268_v54 = vand.u32 2147483647, %v792_v51  ;;  %v326_v63 = vsub.f32 0.0, %v322_v59  ;;  %v329_v0 = vmul.f32 1.442695, %v325_v60  ;;  %vm348_vm3 = vcmp.lt.f32.partialorder %v792_v51, 0.0 }
 0x235   :  { %565 = vrcp.f32 %v274_v52  ;;  %v275_v55 = vadd.f32 1.0, %v271_v53  ;;  %v327_v3 = vsub.f32 0.0, %v323_v61 }
 0x236   :  { %v272_v56 = vmul.f32 0.3275911, %v268_v54  ;;  %v324_v1 = vmul.f32 %v268_v54, %v268_v54  ;;  %v331_v6 = vmul.f32 1.442695, %v326_v63 }
 0x237   :  { %567 = vrcp.f32 %v275_v55  ;;  %v333_v11 = vmul.f32 1.442695, %v327_v3 }
 0x238   :  { %v276_v57 = vadd.f32 1.0, %v272_v56  ;;  %v328_v9 = vsub.f32 0.0, %v324_v1 }
 0x23a   :  { %569 = vrcp.f32 %v276_v57  ;;  %v335_v18 = vmul.f32 1.442695, %v328_v9 }
 0x23b   :  { %571 = vpow2.f32 %v329_v0 }
 0x23c   :  { %573 = vpow2.f32 %v331_v6 }
 0x23d   :  { %575 = vpow2.f32 %v333_v11 }
 0x23e   :  { %577 = vpow2.f32 %v335_v18  ;;  %v510_v18 = vld [vmem:[%s818_s6] ss:$0 sm:$0xff] }
 0x240   :  { %v564_v62 = vpop.eup %563 }
 0x241   :  { %v285_v2 = vmul.f32 1.0614054, %v564_v62 }
 0x242   :  { %v566_v4 = vpop.eup %565 }
 0x243   :  { %v289_v5 = vadd.f32 -1.4531521, %v285_v2  ;;  %v286_v7 = vmul.f32 1.0614054, %v566_v4 }
 0x244   :  { %v568_v8 = vpop.eup %567 }
 0x245   :  { %v293_v10 = vmul.f32 %v564_v62, %v289_v5  ;;  %v290_v12 = vadd.f32 -1.4531521, %v286_v7  ;;  %v287_v13 = vmul.f32 1.0614054, %v568_v8  ;;  %v358_v7 = vmul.f32 0.5, %v776_v38 }
 0x247   :  { %v297_v14 = vadd.f32 1.4214138, %v293_v10  ;;  %v570_v15 = vpop.eup %569  ;;  %v294_v16 = vmul.f32 %v566_v4, %v290_v12  ;;  %v291_v17 = vadd.f32 -1.4531521, %v287_v13 }
 0x248   :  { %v288_v20 = vmul.f32 1.0614054, %v570_v15  ;;  %v572_v40 = vpop.eup %571 }
 0x249   :  { %v301_v19 = vmul.f32 %v564_v62, %v297_v14  ;;  %v298_v21 = vadd.f32 1.4214138, %v294_v16  ;;  %v295_v22 = vmul.f32 %v568_v8, %v291_v17  ;;  %v574_v52 = vpop.eup %573 }
 0x24a   :  { %v292_v24 = vadd.f32 -1.4531521, %v288_v20  ;;  %v576_v57 = vpop.eup %575 }
 0x24b   :  { %v305_v23 = vadd.f32 -0.28449672, %v301_v19  ;;  %v302_v25 = vmul.f32 %v566_v4, %v298_v21  ;;  %v299_v26 = vadd.f32 1.4214138, %v295_v22  ;;  %v578_v0 = vpop.eup %577 }
 0x24c   :  { %v296_v28 = vmul.f32 %v570_v15, %v292_v24 }
 0x24d   :  { %v309_v27 = vmul.f32 %v564_v62, %v305_v23  ;;  %v306_v29 = vadd.f32 -0.28449672, %v302_v25  ;;  %v303_v30 = vmul.f32 %v568_v8, %v299_v26 }
 0x24e   :  { %v300_v32 = vadd.f32 1.4214138, %v296_v28 }
 0x24f   :  { %v313_v31 = vadd.f32 0.2548296, %v309_v27  ;;  %v310_v33 = vmul.f32 %v566_v4, %v306_v29  ;;  %v307_v34 = vadd.f32 -0.28449672, %v303_v30 }
 0x250   :  { %v304_v39 = vmul.f32 %v570_v15, %v300_v32 }
 0x251   :  { %v317_v36 = vmul.f32 %v564_v62, %v313_v31  ;;  %v314_v43 = vadd.f32 0.2548296, %v310_v33  ;;  %v311_v44 = vmul.f32 %v568_v8, %v307_v34 }
 0x252   :  { %v308_v48 = vadd.f32 -0.28449672, %v304_v39 }
 0x253   :  { %v337_v45 = vmul.f32 %v572_v40, %v317_v36  ;;  %v318_v49 = vmul.f32 %v566_v4, %v314_v43  ;;  %v315_v50 = vadd.f32 0.2548296, %v311_v44 }
 0x254   :  { %v312_v54 = vmul.f32 %v570_v15, %v308_v48 }
 0x255   :  { %v341_v53 = vsub.f32 1.0, %v337_v45  ;;  %v338_v55 = vmul.f32 %v574_v52, %v318_v49  ;;  %v319_v56 = vmul.f32 %v568_v8, %v315_v50 }
 0x256   :  { %v316_v59 = vadd.f32 0.2548296, %v312_v54 }
 0x257   :  { %v349_v58 = vsub.f32 0.0, %v341_v53  ;;  %v342_v60 = vsub.f32 1.0, %v338_v55  ;;  %v339_v61 = vmul.f32 %v576_v57, %v319_v56 }
 0x258   :  { %v320_v63 = vmul.f32 %v570_v15, %v316_v59  ;;  %v360_v15 = vmul.f32 0.5, %v788_v47 }
 0x259   :  { %v353_v62 = vsel %vm345_vm0, %v349_v58, %v341_v53  ;;  %v350_v1 = vsub.f32 0.0, %v342_v60  ;;  %v343_v2 = vsub.f32 1.0, %v339_v61 }
 0x25a   :  { %v340_v3 = vmul.f32 %v578_v0, %v320_v63  ;;  %v361_v5 = vadd.f32 1.0, %v353_v62 }
 0x25b   :  { %v354_v4 = vsel %vm346_vm1, %v350_v1, %v342_v60  ;;  %v351_v6 = vsub.f32 0.0, %v343_v2 }
 0x25c   :  { %v362_v8 = vadd.f32 1.0, %v354_v4  ;;  %v344_v9 = vsub.f32 1.0, %v340_v3  ;;  %v365_v13 = vmul.f32 %v361_v5, %v357_v37 }
 0x25d   :  { %v355_v10 = vsel %vm347_vm2, %v351_v6, %v343_v2 }
 0x25e   :  { %v366_v11 = vmul.f32 %v362_v8, %v358_v7  ;;  %v352_v12 = vsub.f32 0.0, %v344_v9  ;;  %v363_v14 = vadd.f32 1.0, %v355_v10 }
 0x260   :  { %467 = vmatprep.mubr.f32.mxu1 %v366_v11  ;;  %v356_v41 = vsel %vm348_vm3, %v352_v12, %v344_v9  ;;  %v367_v17 = vmul.f32 %v363_v14, %v359_v46 }
 0x261   :  { %468 = vmatmul.mubr.f32.vlgmr.msra.gmra.mxu1 %v365_v13  ;;  %v364_v16 = vadd.f32 1.0, %v356_v41 }
 0x263   :  { %v368_v38 = vmul.f32 %v364_v16, %v360_v15 }
 0x265   :  { %472 = vmatprep.mubr.f32.mxu1 %v368_v38 }
 0x266   :  { %473 = vmatmul.mubr.f32.gmra.mxu1 %v367_v17 }
 0x321   :  { %v543_v35 = vpop.f32.mrf.mxu1 }
 0x323   :  { %v544_v51 = vpop.f32.mrf.mxu1 }
 0x324   :  { %v545_v19 = vadd.f32 %v544_v51, %v543_v35 }
 0x326   :  { %v478_v20 = vadd.f32 %v545_v19, %v510_v18  ;;  %v546_v21 = vpop.f32.mrf.mxu1 }
 0x328   :  { %487 = vst [vmem:[#allocation12] sm:$0xff] %v478_v20  ;;  %v547_v22 = vpop.f32.mrf.mxu1 }
 0x329   :  { %v548_v47 = vadd.f32 %v547_v22, %v546_v21 }
 0x32b   :  { %v479_v23 = vadd.f32 %v548_v47, %v510_v18 }
 0x32d   :  { %488 = vst [vmem:[#allocation12 + $0x8] sm:$0xff] %v479_v23 }
 0x32e   :  { %670 = shalt.err (!%p667_p10)
}
 0x32f   :  { %500 = dma.vmem_to_hbm [thread:$0]  %s495_s27, 256, %s819_s7, [#allocation6], %s689_s10, %s689_s10, %s690_s11  }
 0x330   :  { %685 = dma.done.wait [#allocation6], 256  }
 0x331   :  { %686 = vsyncadd [#allocation6], 4294967040 }
 0x332   :  { %504 = vsyncpa [#allocation5], 1 }
 0x333   :  { %505 = vsyncpa [#allocation8], 1 }
 0x334   :  { %506 = vsyncpa [#allocation11], 1 }
 0x335   :  { %507 = vsyncpa [#allocation6], 1 }

</bundles_post_ra>
